<compile_context>
chip_gen: v6e
topology: v6e:2x2x1
jax: 0.10.0
libtpu: 0.0.40
codegen_flags: <defaults>
</compile_context>

<pallas_src>
import functools

import jax
import jax.numpy as jnp
from jax import lax
from jax.experimental import pallas as pl
from jax.experimental.pallas import tpu as pltpu


def _round_up(x, m):
    return ((x + m - 1) // m) * m


def _self_attention_kernel(x_ref, w_ref, b_ref, mask_ref, o_ref, *, d_pad):
    """One grid step = one chunk of `rows = bb * S` tokens.

    x_ref:    (rows, D)        f32 or bf16 input chunk
    w_ref:    (D, 3*d_pad)     bf16 fused [Wq^T*scale | Wk^T | Wv^T], zero-padded
    b_ref:    (1, 3*d_pad)     f32  fused biases (bq pre-scaled), zero-padded
    mask_ref: (rows, rows)     f32  additive block-diagonal mask (0 / -1e30)
    o_ref:    (rows, d_pad)    f32 or bf16 lane-dense output slab
    """
    x = x_ref[...].astype(jnp.bfloat16)          # no-op when x already arrives as bf16

    # Single fused QKV projection on the MXU, f32 accumulation, f32 bias add.
    qkv = lax.dot_general(
        x, w_ref[...], dimension_numbers=(((1,), (0,)), ((), ())),
        preferred_element_type=jnp.float32) + b_ref[...]          # (rows, 3*d_pad)

    # 128-lane-aligned slices; 1/sqrt(D) was folded into the q columns at prep time.
    q = qkv[:, 0:d_pad].astype(jnp.bfloat16)
    k = qkv[:, d_pad:2 * d_pad].astype(jnp.bfloat16)
    v = qkv[:, 2 * d_pad:3 * d_pad].astype(jnp.bfloat16)

    # One scores matmul for ALL batches in this chunk (no k.T materialization);
    # cross-batch entries are killed by the additive block-diagonal mask.
    s = lax.dot_general(
        q, k, dimension_numbers=(((1,), (1,)), ((), ())),
        preferred_element_type=jnp.float32)                       # (rows, rows) f32
    s = s + mask_ref[...]

    # Softmax over the key axis (torch dim=2), math in f32, denom via EUP reciprocal.
    s = s - jnp.max(s, axis=-1, keepdims=True)
    p = jnp.exp(s)
    attn = p * pl.reciprocal(jnp.sum(p, axis=-1, keepdims=True), approx=True)

    out = lax.dot_general(
        attn.astype(jnp.bfloat16), v,
        dimension_numbers=(((1,), (0,)), ((), ())),
        preferred_element_type=jnp.float32)                       # (rows, d_pad)

    o_ref[...] = out.astype(o_ref.dtype)


def prepare_self_attention_params(wq, bq, wk, bk, wv, bv):
    """Hoisted, call-once weight prep.  torch nn.Linear weights are (out, in)."""
    d_model = int(wq.shape[0])
    d_pad = _round_up(d_model, 128)
    inv_scale = 1.0 / (float(d_model) ** 0.5)

    def prep_w(w, scale=1.0):
        return jnp.pad(w.T * scale, ((0, 0), (0, d_pad - d_model)))

    def prep_b(b, scale=1.0):
        return jnp.pad(b * scale, (0, d_pad - d_model))

    # Padded columns are exact zeros -> padded q/k/v/out lanes are exact zeros.
    w_fused = jnp.concatenate(
        [prep_w(wq, inv_scale), prep_w(wk), prep_w(wv)], axis=1
    ).astype(jnp.bfloat16)                                        # (D, 3*d_pad)
    b_fused = jnp.concatenate(
        [prep_b(bq, inv_scale), prep_b(bk), prep_b(bv)]
    ).reshape(1, 3 * d_pad).astype(jnp.float32)                   # (1, 3*d_pad)
    return {"w_fused": w_fused, "b_fused": b_fused,
            "d_model": d_model, "d_pad": d_pad}


def self_attention(x, params, *, batch_block=8):
    """x: (B, S, D).  params from prepare_self_attention_params()."""
    B, S, D = x.shape
    assert D == params["d_model"]
    assert S % 8 == 0  # TODO(synk): pad + mask ragged sequence lengths
    d_pad = params["d_pad"]

    # Batches per grid step.  Keep >= 2 grid steps whenever B >= 2 so both of
    # v7x's TensorCores get work on the "parallel" grid axis.
    bb = max(1, min(batch_block, B))
    if B >= 2:
        bb = min(bb, pl.cdiv(B, 2))
    b_pad = _round_up(B, bb)
    rows = bb * S
    grid = (b_pad // bb,)

    # bf16 I/O halves HBM traffic but needs 16-sublane-aligned row blocks.
    use_bf16_io = (rows % 16 == 0)
    io_dtype = jnp.bfloat16 if use_bf16_io else jnp.float32

    x_in = x.astype(io_dtype)
    if b_pad != B:
        x_in = jnp.pad(x_in, ((0, b_pad - B), (0, 0), (0, 0)))
    x_flat = x_in.reshape(b_pad * S, D)

    # Additive block-diagonal mask: 0 within a batch, -1e30 across batches of the
    # same chunk.  Constant index_map -> fetched once, stays resident in VMEM.
    batch_ids = jnp.repeat(jnp.arange(bb, dtype=jnp.int32), S)
    mask = jnp.where(batch_ids[:, None] == batch_ids[None, :],
                     jnp.float32(0.0), jnp.float32(-1e30))        # (rows, rows)

    kernel = functools.partial(_self_attention_kernel, d_pad=d_pad)

    steps = b_pad // bb
    flops = steps * (2 * rows * D * (3 * d_pad)       # fused QKV projection
                     + 2 * 2 * rows * rows * d_pad)   # QK^T + PV
    cost = pl.CostEstimate(
        flops=flops,
        transcendentals=steps * rows * rows,
        bytes_accessed=(x_flat.size * x_flat.dtype.itemsize
                        + params["w_fused"].size * 2
                        + params["b_fused"].size * 4
                        + mask.size * 4
                        + b_pad * S * d_pad * jnp.dtype(io_dtype).itemsize),
    )

    out = pl.pallas_call(
        kernel,
        out_shape=jax.ShapeDtypeStruct((b_pad * S, d_pad), io_dtype),
        grid_spec=pltpu.PrefetchScalarGridSpec(
            num_scalar_prefetch=0,
            grid=grid,
            in_specs=[
                pl.BlockSpec((rows, D), lambda i: (i, 0)),         # x chunk
                pl.BlockSpec((D, 3 * d_pad), lambda i: (0, 0)),    # fused weights
                pl.BlockSpec((1, 3 * d_pad), lambda i: (0, 0)),    # fused biases
                pl.BlockSpec((rows, rows), lambda i: (0, 0)),      # block-diag mask
            ],
            out_specs=pl.BlockSpec((rows, d_pad), lambda i: (i, 0)),
        ),
        compiler_params=pltpu.CompilerParams(
            dimension_semantics=("parallel",),
            vmem_limit_bytes=32 * 1024 * 1024),
        cost_estimate=cost,
    )(x_flat, params["w_fused"], params["b_fused"], mask)

    return out.reshape(b_pad, S, d_pad)[:B, :, :D].astype(x.dtype)


def _reference(x, wq, bq, wk, bk, wv, bv):
    q = x @ wq.T + bq
    k = x @ wk.T + bk
    v = x @ wv.T + bv
    scores = jnp.einsum("bqd,bkd->bqk", q, k) / jnp.sqrt(jnp.float32(x.shape[-1]))
    attn = jax.nn.softmax(scores, axis=2)
    return jnp.einsum("bqk,bkd->bqd", attn, v)


if __name__ == "__main__":
    B, S, D = 2, 8, 32  # input_dim = 32
    key = jax.random.PRNGKey(0)
    kx, kq, kbq, kk, kbk, kv, kbv, kx2 = jax.random.split(key, 8)

    x = jax.random.normal(kx, (B, S, D), dtype=jnp.float32)
    # Deterministic synthetic init, torch nn.Linear-like uniform(-1/sqrt(D), 1/sqrt(D))
    lim = 1.0 / (D ** 0.5)
    wq = jax.random.uniform(kq, (D, D), jnp.float32, -lim, lim)
    bq = jax.random.uniform(kbq, (D,), jnp.float32, -lim, lim)
    wk = jax.random.uniform(kk, (D, D), jnp.float32, -lim, lim)
    bk = jax.random.uniform(kbk, (D,), jnp.float32, -lim, lim)
    wv = jax.random.uniform(kv, (D, D), jnp.float32, -lim, lim)
    bv = jax.random.uniform(kbv, (D,), jnp.float32, -lim, lim)

    # Hoisted weight prep: computed once, reused for every forward call.
    params = prepare_self_attention_params(wq, bq, wk, bk, wv, bv)

    # Test 1: B=2 -> bb=1, two parallel grid steps, f32 I/O path, zero mask.
    out = jax.block_until_ready(self_attention(x, params))
    ref = _reference(x, wq, bq, wk, bk, wv, bv)
    assert out.shape == (B, S, D)
    err = jnp.max(jnp.abs(out - ref))
    assert jnp.allclose(out, ref, atol=3e-2, rtol=3e-2), f"max err {err}"

    # Test 2: B=5, bb=2 -> bf16 I/O path, batch padding and block-diagonal masking.
    B2 = 5
    x2 = jax.random.normal(kx2, (B2, S, D), dtype=jnp.float32)
    out2 = jax.block_until_ready(self_attention(x2, params, batch_block=2))
    ref2 = _reference(x2, wq, bq, wk, bk, wv, bv)
    assert out2.shape == (B2, S, D)
    err2 = jnp.max(jnp.abs(out2 - ref2))
    assert jnp.allclose(out2, ref2, atol=3e-2, rtol=3e-2), f"max err {err2}"

    print("KERNEL_OK")
</pallas_src>

<mosaic_0001>
module attributes {stable_mosaic.version = 11 : i64} {
  func.func @_self_attention_kernel(%arg0: i32, %arg1: memref<8x32xf32, #tpu.memory_space<vmem>>, %arg2: memref<32x384xbf16, #tpu.memory_space<vmem>>, %arg3: memref<1x384xf32, #tpu.memory_space<vmem>>, %arg4: memref<8x8xf32, #tpu.memory_space<vmem>>, %arg5: memref<8x128xf32, #tpu.memory_space<vmem>>) attributes {dimension_semantics = [#tpu.dimension_semantics<parallel>], iteration_bounds = array<i64: 2>, scalar_prefetch = 0 : i64, scratch_operands = 0 : i64, tpu.core_type = #tpu.core_type<tc>, window_params = [{transform_indices = @transform_0, window_bounds = array<i64: 8, 32>}, {pipeline_mode = #tpu.pipeline_mode<synchronous>, transform_indices = @transform_1, window_bounds = array<i64: 32, 384>}, {pipeline_mode = #tpu.pipeline_mode<synchronous>, transform_indices = @transform_2, window_bounds = array<i64: 1, 384>}, {pipeline_mode = #tpu.pipeline_mode<synchronous>, transform_indices = @transform_3, window_bounds = array<i64: 8, 8>}, {transform_indices = @transform_4, window_bounds = array<i64: 8, 128>}]} {
    %c0 = arith.constant 0 : index
    %c0_0 = arith.constant 0 : index
    %0 = vector.load %arg1[%c0, %c0_0] : memref<8x32xf32, #tpu.memory_space<vmem>>, vector<8x32xf32>
    %1 = arith.truncf %0 : vector<8x32xf32> to vector<8x32xbf16>
    %c0_1 = arith.constant 0 : index
    %c0_2 = arith.constant 0 : index
    %2 = vector.load %arg2[%c0_1, %c0_2] : memref<32x384xbf16, #tpu.memory_space<vmem>>, vector<32x384xbf16>
    %cst = arith.constant dense<0.000000e+00> : vector<8x384xf32>
    %3 = tpu.matmul %1, %2, %cst {dimension_numbers = #tpu.dot_dimension_numbers<[1], [0], [0], [1], [0, 0, 1, 1], [], []>} : vector<8x32xbf16>, vector<32x384xbf16>, vector<8x384xf32> -> vector<8x384xf32>
    %c0_3 = arith.constant 0 : index
    %c0_4 = arith.constant 0 : index
    %4 = vector.load %arg3[%c0_3, %c0_4] : memref<1x384xf32, #tpu.memory_space<vmem>>, vector<1x384xf32>
    %5 = vector.broadcast %4 : vector<1x384xf32> to vector<8x384xf32>
    %6 = arith.addf %3, %5 : vector<8x384xf32>
    %7 = vector.extract_strided_slice %6 {offsets = [0, 0], sizes = [8, 128], strides = [1, 1]} : vector<8x384xf32> to vector<8x128xf32>
    %8 = arith.truncf %7 : vector<8x128xf32> to vector<8x128xbf16>
    %9 = vector.extract_strided_slice %6 {offsets = [0, 128], sizes = [8, 128], strides = [1, 1]} : vector<8x384xf32> to vector<8x128xf32>
    %10 = arith.truncf %9 : vector<8x128xf32> to vector<8x128xbf16>
    %11 = vector.extract_strided_slice %6 {offsets = [0, 256], sizes = [8, 128], strides = [1, 1]} : vector<8x384xf32> to vector<8x128xf32>
    %12 = arith.truncf %11 : vector<8x128xf32> to vector<8x128xbf16>
    %cst_5 = arith.constant dense<0.000000e+00> : vector<8x8xf32>
    %13 = tpu.matmul %8, %10, %cst_5 {dimension_numbers = #tpu.dot_dimension_numbers<[1], [1], [0], [0], [0, 0, 1, 0], [], []>} : vector<8x128xbf16>, vector<8x128xbf16>, vector<8x8xf32> -> vector<8x8xf32>
    %c0_6 = arith.constant 0 : index
    %c0_7 = arith.constant 0 : index
    %14 = vector.load %arg4[%c0_6, %c0_7] : memref<8x8xf32, #tpu.memory_space<vmem>>, vector<8x8xf32>
    %15 = arith.addf %13, %14 : vector<8x8xf32>
    %cst_8 = arith.constant dense<0xFF800000> : vector<8xf32>
    %16 = vector.multi_reduction <maximumf>, %15, %cst_8 [1] : vector<8x8xf32> to vector<8xf32>
    %17 = vector.shape_cast %16 : vector<8xf32> to vector<8x1xf32>
    %18 = vector.broadcast %17 : vector<8x1xf32> to vector<8x8xf32>
    %19 = arith.subf %15, %18 : vector<8x8xf32>
    %20 = math.exp %19 : vector<8x8xf32>
    %cst_9 = arith.constant dense<0.000000e+00> : vector<8xf32>
    %21 = vector.multi_reduction <add>, %20, %cst_9 [1] : vector<8x8xf32> to vector<8xf32>
    %22 = vector.shape_cast %21 : vector<8xf32> to vector<8x1xf32>
    %23 = tpu.reciprocal %22 {approx = true} : vector<8x1xf32> -> vector<8x1xf32>
    %24 = vector.broadcast %23 : vector<8x1xf32> to vector<8x8xf32>
    %25 = arith.mulf %20, %24 : vector<8x8xf32>
    %26 = arith.truncf %25 : vector<8x8xf32> to vector<8x8xbf16>
    %cst_10 = arith.constant dense<0.000000e+00> : vector<8x128xf32>
    %27 = tpu.matmul %26, %12, %cst_10 {dimension_numbers = #tpu.dot_dimension_numbers<[1], [0], [0], [1], [0, 0, 1, 1], [], []>} : vector<8x8xbf16>, vector<8x128xbf16>, vector<8x128xf32> -> vector<8x128xf32>
    %c0_11 = arith.constant 0 : index
    %c0_12 = arith.constant 0 : index
    %28 = vector.load %arg5[%c0_11, %c0_12] : memref<8x128xf32, #tpu.memory_space<vmem>>, vector<8x128xf32>
    tpu.vector_store %arg5[%c0_11, %c0_12], %27 {strides = array<i32>} : memref<8x128xf32, #tpu.memory_space<vmem>>, vector<8x128xf32>,
    return
  }
  func.func @transform_0(%arg0: i32) -> (i32, i32) {
    %c0_i32 = arith.constant 0 : i32
    %c0_i32_0 = arith.constant 0 : i32
    return %arg0, %c0_i32 : i32, i32
  }
  func.func @transform_1(%arg0: i32) -> (i32, i32) {
    %c0_i32 = arith.constant 0 : i32
    %c0_i32_0 = arith.constant 0 : i32
    %c0_i32_1 = arith.constant 0 : i32
    return %c0_i32, %c0_i32_0 : i32, i32
  }
  func.func @transform_2(%arg0: i32) -> (i32, i32) {
    %c0_i32 = arith.constant 0 : i32
    %c0_i32_0 = arith.constant 0 : i32
    %c0_i32_1 = arith.constant 0 : i32
    return %c0_i32, %c0_i32_0 : i32, i32
  }
  func.func @transform_3(%arg0: i32) -> (i32, i32) {
    %c0_i32 = arith.constant 0 : i32
    %c0_i32_0 = arith.constant 0 : i32
    %c0_i32_1 = arith.constant 0 : i32
    return %c0_i32, %c0_i32_0 : i32, i32
  }
  func.func @transform_4(%arg0: i32) -> (i32, i32) {
    %c0_i32 = arith.constant 0 : i32
    %c0_i32_0 = arith.constant 0 : i32
    return %arg0, %c0_i32 : i32, i32
  }
}

</mosaic_0001>

<bundles_post_ra>
// kernel: tpu_custom_call.1
= control target key start
LH: loop header
LB: loop body
LE: loop exit
PB: predicated region body
PF: predicated region fallthrough
CT: control target
= control target key end

     0   :  { %9 = vsyncpa [#allocation3], 0  ;;  %s1105_s0 = inlined_call_operand.hbm [shape: f32[16,32], index: 0, kind: input, shape index: {}]   ;;  %s1106_s1 = inlined_call_operand.hbm [shape: bf16[32,384], index: 1, kind: input, shape index: {}]   ;;  %s1107_s2 = inlined_call_operand.vmem [shape: f32[1,384], index: 2, kind: input, shape index: {}]   ;;  %s1108_s3 = inlined_call_operand.hbm [shape: f32[8,8], index: 3, kind: input, shape index: {}]   ;;  %s1109_s4 = inlined_call_operand.hbm [shape: f32[16,128], index: 4, kind: output, shape index: {}]  }
   0x1   :  { %11 = vsyncpa [#allocation3 + $0x1], 0 }
   0x2   :  { %12 = vsyncpa [#allocation6], 0 }
   0x3   :  { %13 = vsyncpa [#allocation4], 0 }
   0x4   :  { %15 = vsyncpa [#allocation4 + $0x1], 0  ;;  %s913_s15 = smov 0   ;;  %s915_s16 = smov 0  }
   0x5   :  { %s917_s17 = smov 0   ;;  %s919_s18 = smov 0  }
   0x6 LB: > { %s934_s19 = sadd.s32 4294967295, %s877_s18   ;;  %s593_s20 = sadd.s32 4294967294, %s877_s18   ;;  %s877_s18 = sphi %s919_s18, %s1131_s18   ;;  %s873_s17 = sphi %s917_s17, %s1130_s17   ;;  %s869_s16 = sphi %s915_s16, %s1129_s16   ;;  %s865_s15 = sphi %s913_s15, %s1128_s15  }
   0x7   : > { %p41_p0 = scmp.ne.s32.totalorder %s869_s16, %s865_s15  ;;  %p1110_p1 = scmp.eq.s32.totalorder %s934_s19, 0 }
   0x8   : > { %p134_p3 = scmp.eq.s32.totalorder %s593_s20, 1  ;;  %p594_p5 = scmp.ge.s32.totalorder %s877_s18, 1 }
   0x9   : > { %p943_p4 = por %p1110_p1, %p41_p0  ;;  %p141_p7 = scmp.lt.s32.totalorder %s877_s18, 3 }
   0xa   : > { %p948_p6 = por %p134_p3, %p41_p0  ;;  %s879_s24 = smov [#allocation5]  }
   0xb   : > { %s1114_s21 = scalar_select %p943_p4, 1, 0 }
   0xc   : > { %s1115_s22 = scalar_select %p948_p6, 1, 0 }
   0xd   : > { %p953_p8 = pnand %p594_p5, %p141_p7  ;;  %s153_s25 = sshll.u32 %s879_s24, 4  ;;  %s154_s25 = int_to_ptr.vmem [resolvable:$true] %s153_s25 }
   0xe   : > { %s880_s27 = smov [#allocation7]   ;;  %s740_s29 = scalar_lea.vmem %s154_s25, 768 }
   0xf   : > { %s1116_s23 = scalar_select %p953_p8, 1, 0 }
  0x10   : > { %p657_p9 = pneg %p953_p8  ;;  %s170_s28 = sshll.u32 %s880_s27, 4  ;;  %s171_s28 = int_to_ptr.vmem [resolvable:$true] %s170_s28 }
  0x11   : > { %p741_p13 = scmp.ne.s32.totalorder %s154_s25, %s740_s29  ;;  %p748_p5 = scmp.lt.s32.totalorder %s154_s25, %s154_s25 }
  0x12   : > { %p962_p11 = pnand %p657_p9, %p1110_p1  ;;  %p749_p7 = scmp.lt.s32.totalorder %s740_s29, %s740_s29 }
  0x14   : > { %p731_p12 = pneg %p962_p11  ;;  %p750_p10 = por %p749_p7, %p748_p5 }
  0x16   : > { %p743_p0 = pnand %p741_p13, %p731_p12 }
  0x18   : > { %p744_p3 = pneg %p743_p0 }
  0x1a   : > { %p751_p9 = pnand %p750_p10, %p744_p3 }
  0x1c   : > { %754 = shalt.err (!%p751_p9)
}
  0x1d   : > { %s881_s30 = smov 192   ;;  %s882_s5 = smov 12  }
  0x1e   : > { %660 = dma.hbm_to_vmem [thread:$0]  (!%p962_p11), %s1106_s1, 768, %s154_s25, [#allocation6], %s881_s30, %s881_s30, %s882_s5  }
  0x1f   : > { %s766_s8 = scalar_lea.vmem %s171_s28, 128  ;;  %p774_p2 = scmp.lt.s32.totalorder %s171_s28, %s171_s28 }
  0x20   : > { %p767_p1 = scmp.ne.s32.totalorder %s171_s28, %s766_s8  ;;  %p775_p6 = scmp.lt.s32.totalorder %s766_s8, %s766_s8 }
  0x22   : > { %p769_p13 = pnand %p767_p1, %p731_p12  ;;  %p776_p5 = por %p775_p6, %p774_p2 }
  0x24   : > { %p770_p0 = pneg %p769_p13 }
  0x26   : > { %p777_p10 = pnand %p776_p5, %p770_p0 }
  0x28   : > { %780 = shalt.err (!%p777_p10)
}
  0x29   : > { %663 = dma.hbm_to_vmem [thread:$0]  (!%p962_p11), %s1108_s3, 128, %s171_s28, [#allocation6]  }
  0x2a   : > { %s985_s11 = sadd.s32 1, %s877_s18   ;;  %s28_s12 = sadd.s32 1, %s873_s17 }
  0x2b   : > { %s25_s13 = ssub.s32 %s877_s18, %s985_s11  ;;  %p35_p1 = scmp.ne.s32.totalorder %s873_s17, %s869_s16 }
  0x2c   : > { %p26_p2 = scmp.eq.s32.totalorder %s25_s13, 0  ;;  %p36_p6 = scmp.eq.s32.totalorder %s877_s18, 0 }
  0x2d   : > { %p1118_p12 = scmp.eq.s32.totalorder %s934_s19, 1  ;;  %p674_p7 = scmp.lt.s32.totalorder %s877_s18, 2 }
  0x2e   : > { %s1001_s20 = scalar_select %p26_p2, %s873_s17, %s28_s12  }
  0x2f   : > { %p995_p3 = por %p1118_p12, %p35_p1  ;;  %p37_p9 = por %p36_p6, %p35_p1 }
  0x30   : > { %s181_s24 = sand.u32 1, %s873_s17   ;;  %s599_s26 = sshll.u32 %s877_s18, 7 }
  0x31   : > { %s1119_s14 = scalar_select %p995_p3, 1, 0 }
  0x32   : > { %s598_s25 = sshll.u32 %s181_s24, 3  ;;  %s1008_s29 = scalar_lea.hbm %s1105_s0, %s599_s26 }
  0x33   : > { %s185_s30 = scalar_lea.vmem [#allocation2], %s598_s25  ;;  %p1010_p11 = pnand %p674_p7, %p37_p9 }
  0x34   : > { %s192_s5 = sshll.u32 %s185_s30, 4  ;;  %s182_s7 = scalar_lea.sflag [#allocation3], %s181_s24  ;;  %s193_s5 = int_to_ptr.vmem [resolvable:$true] %s192_s5 }
  0x35   : > { %s781_s8 = scalar_lea.hbm %s1008_s29, 128  ;;  %p783_p0 = pneg %p1010_p11 }
  0x36   : > { %p782_p13 = scmp.ne.s32.totalorder %s1008_s29, %s781_s8  ;;  %s786_s12 = scalar_lea.hbm %s1105_s0, 256 }
  0x37   : > { %p787_p1 = scmp.lt.s32.totalorder %s1008_s29, %s1105_s0  ;;  %p788_p2 = scmp.lt.s32.totalorder %s786_s12, %s781_s8 }
  0x38   : > { %p784_p5 = pnand %p783_p0, %p782_p13 }
  0x39   : > { %p789_p6 = por %p788_p2, %p787_p1 }
  0x3a   : > { %p785_p10 = pneg %p784_p5 }
  0x3c   : > { %p790_p12 = pnand %p789_p6, %p785_p10 }
  0x3e   : > { %793 = shalt.err (!%p790_p12)
}
  0x3f   : > { %s794_s26 = scalar_lea.vmem %s193_s5, 128  ;;  %s883_s24 = smov [#allocation2]  }
  0x40   : > { %p795_p7 = scmp.ne.s32.totalorder %s193_s5, %s794_s26  ;;  %s799_s27 = sshll.u32 %s883_s24, 4  ;;  %s800_s27 = int_to_ptr.vmem [resolvable:$false] %s799_s27 }
  0x41   : > { %s801_s28 = scalar_lea.vmem %s800_s27, 256  ;;  %p802_p13 = scmp.lt.s32.totalorder %s193_s5, %s800_s27 }
  0x42   : > { %p797_p9 = pnand %p795_p7, %p783_p0  ;;  %p803_p5 = scmp.lt.s32.totalorder %s801_s28, %s794_s26 }
  0x44   : > { %p798_p3 = pneg %p797_p9  ;;  %p804_p4 = por %p803_p5, %p802_p13 }
  0x46   : > { %p805_p8 = pnand %p804_p4, %p798_p3 }
  0x48   : > { %808 = shalt.err (!%p805_p8)
}
  0x49   : > { %667 = dma.hbm_to_vmem [thread:$0]  (!%p1010_p11), %s1008_s29, 128, %s193_s5, %s182_s7  }
  0x4a   : > { %p1121_p10 = scmp.ne.s32.totalorder %s1116_s23, 0 }
  0x4b   : > { %s1031_s30 = sand.u32 (!%p1121_p10), 1, %s869_s16   ;;  %p1122_p4 = scmp.ne.s32.totalorder (!%p1121_p10), %s1114_s21, 0 }
  0x4c   : > { %201 = sbr.rel (%p1121_p10) target bundleno = 1018 (0x3fa), region = 36  ;;  %s601_s8 = sshll.u32 (!%p1121_p10), %s1031_s30, 3 }
  0x4d   : > { %s204_s9 = scalar_lea.sflag (!%p1121_p10), [#allocation3], %s1031_s30  ;;  %s207_s10 = scalar_lea.vmem (!%p1121_p10), [#allocation2], %s601_s8 }
  0x51   : > { %852 = dma.done.wait (%p1122_p4), %s204_s9, 128  }
  0x52   : > { %854 = vsyncadd (%p1122_p4), %s204_s9, 4294967168  ;;  %p1123_p8 = scmp.eq.s32.totalorder %s934_s19, 0 }
  0x54   : > { %856 = dma.done.wait (%p1123_p8), [#allocation6], 896   ;;  %p1124_p3 = pmov %p1123_p8 }
  0x55   : > { %v884_v0 = vmov 0   ;;  %v717_v1 = vld [vmem:[#allocation5 + $0x1c] ss:$12 sps:$4 sm:$0xff]   ;;  %v719_v2 = vld [vmem:[#allocation5 + $0x18] ss:$12 sps:$4 sm:$0xff]   ;;  %vm300_vm0 = vcmask 261120   ;;  %v253_v8 = vlaneseq }
  0x56   : > { %858 = vsyncadd (%p1124_p3), [#allocation6], 4294966400  ;;  %336 = vmatprep.mubr.bf16.mxu0 %v884_v0  ;;  %316 = vmatprep.subr.bf16.mxu0 %v717_v1  ;;  %v720_v3 = vld [vmem:[#allocation5 + $0x4] ss:$12 sps:$4 sm:$0xff]   ;;  %v722_v4 = vld [vmem:[#allocation5] ss:$12 sps:$4 sm:$0xff]  }
  0x57   : > { %317 = vmatpush1.bf16.msra.mxu0 %v719_v2  ;;  %v241_v5 = vld [vmem:[%s207_s10] sm:$0xff]  ;;  %v885_v7 = vmov 0.0   ;;  %vm886_vm1 = vmmov 0   ;;  %v254_v9 = vshrl.u32 %v253_v8, 7  ;;  %v723_v23 = vld [vmem:[#allocation5 + $0x20] ss:$12 sps:$4 sm:$0xff]  }
  0x58   : > { %318 = vmatprep.subr.bf16.mxu0 %v720_v3  ;;  %v242_v6 = vpack.c.bf16 %v241_v5, %v241_v5  ;;  %625 = vmatprep.subr.bf16.mxu1 %v885_v7  ;;  %v251_v11 = vld [vmem:[%s1107_s2] sm:$0x7]  ;;  %v724_v24 = vld [vmem:[#allocation5 + $0x8] ss:$12 sps:$4 sm:$0xff]   ;;  %vm429_vm2 = vcmask 64512   ;;  %vm445_vm3 = vcmask 1043456  }
  0x59   : > { %629 = vmatprep.mubr.msk.bf16.mxu1 %vm886_vm1, %v885_v7  ;;  %v259_v10 = vsub.s32 1, %v254_v9  ;;  %v255_v13 = vsub.s32 0, %v254_v9  ;;  %626 = vmatpush3.bf16.msra.mxu1 %v723_v23  ;;  %v388_v25 = vld [vmem:[#allocation7] sm:$0xff]  ;;  %v263_v32 = vsub.s32 2, %v254_v9  ;;  %s239_s29 = scalar_lea.vmem [#allocation8], %s601_s8  ;;  %s615_s6 = sshll.u32 %s934_s19, 7 }
  0x5a   : > { %627 = vmatprep.subr.bf16.mxu1 %v885_v7  ;;  %s504_s5 = sshll.u32 %s239_s29, 4  ;;  %s1064_s13 = scalar_lea.hbm %s1109_s4, %s615_s6  ;;  %s1059_s5 = int_to_ptr.vmem [resolvable:$true] %s504_s5 }
  0x5b   : > { %319 = vmatpush1.bf16.msra.mxu0 %v722_v4  ;;  %v260_v12 = vrot.slane %v251_v11, %v259_v10  ;;  %v256_v17 = vrot.slane %v251_v11, %v255_v13  ;;  %v264_v33 = vrot.slane %v251_v11, %v263_v32  ;;  %s491_s25 = scalar_lea.sflag [#allocation4], %s1031_s30  ;;  %s809_s26 = scalar_lea.vmem %s1059_s5, 128 }
  0x5c   : > { %633 = vmatprep.subr.bf16.mxu0 %v885_v7  ;;  %p810_p11 = scmp.ne.s32.totalorder %s1059_s5, %s809_s26  ;;  %p1125_p0 = scmp.ne.s32.totalorder %s1119_s14, 0 }
  0x5d   : > { %628 = vmatpush3.bf16.msra.mxu1 %v724_v24  ;;  %s887_s19 = smov [#allocation8]  }
  0x5e   : > { %611 = vmatmul.mubr.msk.bf16.vlgmr.msra.gmra.mxu0 %vm300_vm0, %v242_v6  ;;  %639 = vmatprep.subr.bf16.mxu1 %v885_v7  ;;  %p811_p1 = pnand %p810_p11, %p1125_p0  ;;  %s813_s24 = sshll.u32 %s887_s19, 4  ;;  %s814_s24 = int_to_ptr.vmem [resolvable:$false] %s813_s24 }
  0x5f   : > { %635 = vmatprep.mubr.msk.bf16.mxu0 %vm886_vm1, %v885_v7  ;;  %s815_s27 = scalar_lea.vmem %s814_s24, 256  ;;  %p816_p6 = scmp.lt.s32.totalorder %s1059_s5, %s814_s24 }
  0x60   : > { %630 = vmatmul.mubr.msk.bf16.vlgmr.msra.gmra.mxu1 %vm300_vm0, %v242_v6  ;;  %p812_p2 = pneg %p811_p1  ;;  %p817_p12 = scmp.lt.s32.totalorder %s815_s27, %s809_s26 }
  0x61   : > { %641 = vmatprep.mubr.msk.bf16.mxu1 %vm886_vm1, %v885_v7 }
  0x62   : > { %p818_p7 = por %p817_p12, %p816_p6 }
  0x64   : > { %p819_p9 = pnand %p818_p7, %p812_p2 }
 0x11e   : > { %v338_v14 = vpop.f32.mrf.mxu0 }
 0x11f   : > { %v339_v21 = vadd.f32 %v338_v14, %v256_v17 }
 0x120   : > { %v340_v15 = vpop.f32.mrf.mxu0  ;;  %v379_v34 = vpop.f32.mrf.mxu1 }
 0x121   : > { %v341_v16 = vadd.f32 %v340_v15, %v260_v12  ;;  %v385_v22 = vpack.c.bf16 %v339_v21, %v339_v21  ;;  %v380_v35 = vadd.f32 %v379_v34, %v264_v33 }
 0x122   : > { %v342_v18 = vpop.f32.mrf.mxu0  ;;  %v631_v36 = vpop.f32.mrf.mxu1 }
 0x123   : > { %v386_v19 = vpack.c.bf16 %v341_v16, %v341_v16  ;;  %v387_v37 = vpack.c.bf16 %v380_v35, %v380_v35 }
 0x124   : > { %v343_v20 = vpop.f32.mrf.mxu0  ;;  %v382_v38 = vpop.f32.mrf.mxu1 }
 0x125   : > { %634 = vmatpush3.bf16.xpose.msra.mxu0 %v386_v19  ;;  %v447_v39 = vsel %vm445_vm3, %v387_v37, 0 }
 0x126   : > { %v632_v40 = vpop.f32.mrf.mxu1  ;;  %640 = vmatpush3.bf16.msra.mxu1 %v447_v39 }
 0x12c   : > { %636 = vmatmul.mubr.bf16.vlgmr.msra.gmra.mxu0 %v385_v22 }
 0x1ec   : > { %v423_v26 = vpop.f32.mrf.mxu0 }
 0x1ed   : > { %v424_v27 = vadd.f32 %v423_v26, %v388_v25 }
 0x1ee   : > { %v637_v28 = vpop.f32.mrf.mxu0 }
 0x1ef   : > { %v430_v29 = vsel %vm429_vm2, %v424_v27, -inf }
 0x1f0   : > { %431 = vmax.xlane.f32.xlu0 %v430_v29  ;;  %v426_v30 = vpop.f32.mrf.mxu0 }
 0x1f2   : > { %v638_v31 = vpop.f32.mrf.mxu0 }
 0x279   : > { %v432_v41 = vpop.xlane.xlu0 %431 }
 0x27a   : > { %v433_v42 = vsub.f32 %v424_v27, %v432_v41 }
 0x27c   : > { %v434_v43 = vmul.f32 1.442695, %v433_v42 }
 0x27e   : > { %725 = vpow2.f32 %v434_v43 }
 0x28b   : > { %v726_v44 = vpop.eup %725 }
 0x28c   : > { %v436_v45 = vsel %vm429_vm2, %v726_v44, 0.0 }
 0x28d   : > { %437 = vadd.xlane.f32.xlu0 %v436_v45 }
 0x316   : > { %v438_v46 = vpop.xlane.xlu0 %437 }
 0x317   : > { %727 = vrcp.f32 %v438_v46 }
 0x324   : > { %v728_v47 = vpop.eup %727 }
 0x325   : > { %v440_v48 = vmul.f32 %v728_v47, %v726_v44 }
 0x327   : > { %v441_v49 = vpack.c.bf16 %v440_v48, %v440_v48 }
 0x329   : > { %642 = vmatmul.mubr.msk.bf16.vlgmr.msra.gmra.mxu1 %vm429_vm2, %v441_v49 }
 0x3e9   : > { %v483_v50 = vpop.f32.mrf.mxu1 }
 0x3ea   : > { %489 = vst [vmem:[%s239_s29] sm:$0xff] %v483_v50 }
 0x3eb   : > { %v643_v51 = vpop.f32.mrf.mxu1 }
 0x3ec   : > { %822 = shalt.err (!%p819_p9)
}
 0x3ed   : > { %s823_s28 = scalar_lea.hbm %s1064_s13, 128  ;;  %s827_s9 = scalar_lea.hbm %s1109_s4, 256 }
 0x3ee   : > { %p824_p13 = scmp.ne.s32.totalorder %s1064_s13, %s823_s28  ;;  %p828_p4 = scmp.lt.s32.totalorder %s1064_s13, %s1109_s4 }
 0x3ef   : > { %p829_p8 = scmp.lt.s32.totalorder %s827_s9, %s823_s28 }
 0x3f0   : > { %p825_p5 = pnand %p824_p13, %p1125_p0 }
 0x3f1   : > { %p830_p3 = por %p829_p8, %p828_p4 }
 0x3f2   : > { %p826_p10 = pneg %p825_p5 }
 0x3f4   : > { %p831_p11 = pnand %p830_p3, %p826_p10 }
 0x3f6   : > { %834 = shalt.err (!%p831_p11)
}
 0x3f7   : > { %655 = dma.vmem_to_hbm [thread:$0]  (%p1125_p0), %s1059_s5, 128, %s1064_s13, %s491_s25   ;;  %v486_v52 = vpop.f32.mrf.mxu1 }
 0x3f9   : > { %v644_v53 = vpop.f32.mrf.mxu1 }
 0x3fa PF: > { %s516_s23 = sand.u32 1, %s865_s15   ;;  %p1126_p1 = scmp.ne.s32.totalorder %s1115_s22, 0 }
 0x3fb   : > { %p1127_p2 = scmp.ge.s32.totalorder %s877_s18, 2  ;;  %s517_s29 = scalar_lea.sflag [#allocation4], %s516_s23 }
 0x3fd   : > { %p669_p6 = pnand %p1127_p2, %p1126_p1 }
 0x3ff   : > { %p670_p12 = pneg %p669_p6 }
 0x401   : > { %860 = dma.done.wait (%p670_p12), %s517_s29, 128  }
 0x402   : > { %862 = vsyncadd (%p670_p12), %s517_s29, 4294967168  ;;  %p18_p0 = scmp.ge.s32.totalorder %s985_s11, 4   ;;  %s1128_s15 = smov %s869_s16 }
 0x403   : > { %s1129_s16 = smov %s873_s17  ;;  %s1130_s17 = smov %s1001_s20 }
 0x404   : > { %s1131_s18 = smov %s985_s11  ;;  %20 = sbr.rel (!%p18_p0) target bundleno = 6 (0x6), region = 89 }
 0x409   :  { %522 = vsyncpa [#allocation3], 1 }
 0x40a   :  { %524 = vsyncpa [#allocation3 + $0x1], 1 }
 0x40b   :  { %525 = vsyncpa [#allocation6], 1 }
 0x40c   :  { %526 = vsyncpa [#allocation4], 1 }
 0x40d   :  { %528 = vsyncpa [#allocation4 + $0x1], 1 }

</bundles_post_ra>
